<compile_context>
chip_gen: v5e
topology: v5e:2x2
jax: 0.10.0
libtpu: 0.0.40
codegen_flags: <defaults>
</compile_context>

<pallas_src>
import functools

import jax
import jax.numpy as jnp
from jax.experimental import pallas as pl
from jax.experimental.pallas import tpu as pltpu


def _round_up(x, m):
    return ((x + m - 1) // m) * m


# ----------------------------- Pallas kernel ------------------------------- #
def _make_prober_kernel(tb, s):
    """Kernel for one grid step covering `tb` sequences of length `s`."""

    def kernel(mask_ref, x_ref, w1_ref, b1_ref, w2_ref, b2_ref,
               hid_ref, pooled_ref):
        # x_ref   : (TM, Hp) bf16  flattened (seq-major) token embeddings
        # mask_ref: (tb, s)  f32
        # w1_ref  : (Hp, Fp) bf16 ; b1_ref (1, Fp) f32
        # w2_ref  : (Fp, Hp) bf16 ; b2_ref (1, Hp) f32
        # hid_ref : (TM, Hp) bf16  per-token contextual embeddings
        # pooled  : (tb, Hp) f32   masked-mean pooled sequence embeddings
        x = x_ref[...]                                         # bf16

        # MXU hot path: one large matmul per layer, f32 accumulation.
        h = jnp.dot(x, w1_ref[...], preferred_element_type=jnp.float32)
        h = h + b1_ref[...]                                    # (TM, Fp) f32
        # NOTE: tanh-approx GELU (PyTorch nn.GELU default is exact erf); the
        # approximation is a deliberate choice — the PyTorch forward is a stub.
        h = jax.nn.gelu(h)                                     # f32, VPU/EUP
        y = jnp.dot(h.astype(jnp.bfloat16), w2_ref[...],
                    preferred_element_type=jnp.float32)
        y = y + b2_ref[...]                                    # (TM, Hp) f32

        hid_ref[...] = y.astype(hid_ref.dtype)                 # lane-dense vst

        # Masked mean pooling per sequence (VPU/XLU reduction, EUP recip).
        m = mask_ref[...]                                      # (tb, s) f32
        y3 = y.reshape(tb, s, y.shape[-1])                     # (tb, s, Hp)
        masked_sum = jnp.sum(y3 * m[:, :, None], axis=1)       # (tb, Hp)
        denom = jnp.maximum(jnp.sum(m, axis=1, keepdims=True), 1.0)
        pooled_ref[...] = masked_sum * pl.reciprocal(denom, approx=True)

    return kernel


def embedder_pallas(x, mask, w1p, b1p, w2p, b2p, *, tb_seqs=8):
    """x: (B2, S, Hp) bf16 (Hp a multiple of 128), mask: (B2, S) f32."""
    B2, S, Hp = x.shape
    Fp = w1p.shape[1]

    # Pad the fused batch so each grid step handles `tb_seqs` full sequences
    # (tb_seqs is a multiple of 8 -> sublane-aligned pooled output blocks).
    BP = _round_up(B2, tb_seqs)
    if BP != B2:
        x = jnp.pad(x, ((0, BP - B2), (0, 0), (0, 0)))
        mask = jnp.pad(mask, ((0, BP - B2), (0, 0)))

    x2d = x.reshape(BP * S, Hp)              # collapse (batch, seq) -> matmul M
    TM = tb_seqs * S
    n_tiles = BP // tb_seqs

    grid_spec = pltpu.PrefetchScalarGridSpec(
        num_scalar_prefetch=0,
        grid=(n_tiles,),
        in_specs=[
            pl.BlockSpec((tb_seqs, S), lambda i: (i, 0)),      # mask (per step)
            pl.BlockSpec((TM, Hp), lambda i: (i, 0)),          # x tile
            pl.BlockSpec((Hp, Fp), lambda i: (0, 0)),          # w1
            pl.BlockSpec((1, Fp), lambda i: (0, 0)),           # b1
            pl.BlockSpec((Fp, Hp), lambda i: (0, 0)),          # w2
            pl.BlockSpec((1, Hp), lambda i: (0, 0)),           # b2
        ],
        out_specs=[
            pl.BlockSpec((TM, Hp), lambda i: (i, 0)),          # hidden (bf16)
            pl.BlockSpec((tb_seqs, Hp), lambda i: (i, 0)),     # pooled (f32)
        ],
    )

    flops = 2 * BP * S * (Hp * Fp + Fp * Hp)
    bytes_accessed = (x2d.size * 2 + w1p.size * 2 + w2p.size * 2
                      + b1p.size * 4 + b2p.size * 4 + mask.size * 4
                      + BP * S * Hp * 2 + BP * Hp * 4)
    cost = pl.CostEstimate(flops=flops,
                           transcendentals=BP * S * Fp + BP,
                           bytes_accessed=bytes_accessed)

    hidden2d, pooled = pl.pallas_call(
        _make_prober_kernel(tb_seqs, S),
        grid_spec=grid_spec,
        out_shape=(
            jax.ShapeDtypeStruct((BP * S, Hp), jnp.bfloat16),
            jax.ShapeDtypeStruct((BP, Hp), jnp.float32),
        ),
        compiler_params=pltpu.CompilerParams(
            dimension_semantics=("parallel",)),
        cost_estimate=cost,
    )(mask, x2d, w1p, b1p, w2p, b2p)

    hidden = hidden2d.reshape(BP, S, Hp)[:B2]
    return hidden, pooled[:B2]


# ----------------------------- module wrapper ------------------------------ #
class LongFormerProberPallas:
    def __init__(self, vocab_size=100, hidden=32, ffn=64, word_top=4, seed=0):
        self.top_iw = word_top
        self.hidden = hidden
        hp = _round_up(hidden, 128)
        fp = _round_up(ffn, 128)

        k = jax.random.PRNGKey(seed)
        k_emb, k_w1, k_w2 = jax.random.split(k, 3)
        scale = 0.02
        emb = scale * jax.random.normal(k_emb, (vocab_size, hidden), jnp.float32)
        w1 = scale * jax.random.normal(k_w1, (hidden, ffn), jnp.float32)
        w2 = scale * jax.random.normal(k_w2, (ffn, hidden), jnp.float32)

        # Zero-pad hidden/FFN dims to lane-dense multiples of 128 and pre-cast
        # the MXU operands to bf16 (f32 accumulation happens in-kernel).
        self.embedding_table = (
            jnp.zeros((vocab_size, hp), jnp.bfloat16)
            .at[:, :hidden].set(emb.astype(jnp.bfloat16)))
        self.w1p = (jnp.zeros((hp, fp), jnp.bfloat16)
                    .at[:hidden, :ffn].set(w1.astype(jnp.bfloat16)))
        self.b1p = jnp.zeros((1, fp), jnp.float32)
        self.w2p = (jnp.zeros((fp, hp), jnp.bfloat16)
                    .at[:ffn, :hidden].set(w2.astype(jnp.bfloat16)))
        self.b2p = jnp.zeros((1, hp), jnp.float32)

    @functools.partial(jax.jit, static_argnums=0)
    def forward(self, review_embedder_input, reply_embedder_input,
                review_sorted_iw_spans, reply_sorted_iw_spans):
        rev_ids, rev_mask = review_embedder_input
        rep_ids, rep_mask = reply_embedder_input
        B = rev_ids.shape[0]

        # Fuse review + reply into ONE embedder pass (one pallas_call).
        ids = jnp.concatenate([rev_ids, rep_ids], axis=0)         # (2B, S)
        mask = jnp.concatenate([rev_mask, rep_mask],
                               axis=0).astype(jnp.float32)        # (2B, S)
        # Glue: vocab embedding lookup (gather) stays in plain JAX; the table
        # is already bf16 and padded to Hp, so no extra pad/cast is needed.
        x = jnp.take(self.embedding_table, ids, axis=0)           # (2B, S, Hp)

        hidden, pooled = embedder_pallas(
            x, mask, self.w1p, self.b1p, self.w2p, self.b2p)

        H = self.hidden
        rev_pooled, rep_pooled = pooled[:B, :H], pooled[B:2 * B, :H]

        # Top important-word spans: gather the hidden state at each span start
        # (glue gather; the heavy compute already ran in the Pallas kernel).
        def gather_spans(hid, spans):
            starts = spans[:, : self.top_iw, 0]                   # (B, top_iw)
            rows = jnp.take_along_axis(hid, starts[:, :, None], axis=1)
            return rows[..., :H].astype(jnp.float32)              # (B, top_iw, H)

        rev_iw = gather_spans(hidden[:B], review_sorted_iw_spans)
        rep_iw = gather_spans(hidden[B:2 * B], reply_sorted_iw_spans)
        return rev_pooled, rep_pooled, rev_iw, rep_iw


# --------------------------------- main ------------------------------------ #
if __name__ == "__main__":
    B, S, H, V, TOP = 2, 16, 32, 100, 4

    key = jax.random.PRNGKey(0)
    k1, k2, k3, k4 = jax.random.split(key, 4)

    review_ids = jax.random.randint(k1, (B, S), 0, V, dtype=jnp.int32)
    reply_ids = jax.random.randint(k2, (B, S), 0, V, dtype=jnp.int32)
    review_mask = jnp.ones((B, S), jnp.int32).at[:, S - 3:].set(0)
    reply_mask = jnp.ones((B, S), jnp.int32).at[:, S - 5:].set(0)

    review_spans = jnp.stack(
        [jax.random.randint(k3, (B, TOP), 0, S - 1, dtype=jnp.int32),
         jax.random.randint(k3, (B, TOP), 1, S, dtype=jnp.int32)], axis=-1)
    reply_spans = jnp.stack(
        [jax.random.randint(k4, (B, TOP), 0, S - 1, dtype=jnp.int32),
         jax.random.randint(k4, (B, TOP), 1, S, dtype=jnp.int32)], axis=-1)

    prober = LongFormerProberPallas(vocab_size=V, hidden=H, ffn=64,
                                    word_top=TOP, seed=0)

    outs = prober.forward((review_ids, review_mask),
                          (reply_ids, reply_mask),
                          review_spans, reply_spans)
    outs = jax.block_until_ready(outs)

    rev_pooled, rep_pooled, rev_iw, rep_iw = outs
    assert rev_pooled.shape == (B, H)
    assert rep_pooled.shape == (B, H)
    assert rev_iw.shape == (B, TOP, H)
    assert rep_iw.shape == (B, TOP, H)
    assert bool(jnp.all(jnp.isfinite(rev_pooled)))
    assert bool(jnp.all(jnp.isfinite(rep_pooled)))
    print("KERNEL_OK")
</pallas_src>

<mosaic_0001>
module attributes {stable_mosaic.version = 11 : i64} {
  func.func @kernel(%arg0: i32, %arg1: memref<8x16xf32, #tpu.memory_space<vmem>>, %arg2: memref<128x128xbf16, #tpu.memory_space<vmem>>, %arg3: memref<128x128xbf16, #tpu.memory_space<vmem>>, %arg4: memref<1x128xf32, #tpu.memory_space<vmem>>, %arg5: memref<128x128xbf16, #tpu.memory_space<vmem>>, %arg6: memref<1x128xf32, #tpu.memory_space<vmem>>, %arg7: memref<128x128xbf16, #tpu.memory_space<vmem>>, %arg8: memref<8x128xf32, #tpu.memory_space<vmem>>) attributes {dimension_semantics = [#tpu.dimension_semantics<parallel>], iteration_bounds = array<i64: 1>, scalar_prefetch = 0 : i64, scratch_operands = 0 : i64, tpu.core_type = #tpu.core_type<tc>, window_params = [{transform_indices = @transform_0, window_bounds = array<i64: 8, 16>}, {transform_indices = @transform_1, window_bounds = array<i64: 128, 128>}, {pipeline_mode = #tpu.pipeline_mode<synchronous>, transform_indices = @transform_2, window_bounds = array<i64: 128, 128>}, {pipeline_mode = #tpu.pipeline_mode<synchronous>, transform_indices = @transform_3, window_bounds = array<i64: 1, 128>}, {pipeline_mode = #tpu.pipeline_mode<synchronous>, transform_indices = @transform_4, window_bounds = array<i64: 128, 128>}, {pipeline_mode = #tpu.pipeline_mode<synchronous>, transform_indices = @transform_5, window_bounds = array<i64: 1, 128>}, {transform_indices = @transform_6, window_bounds = array<i64: 128, 128>}, {transform_indices = @transform_7, window_bounds = array<i64: 8, 128>}]} {
    %c0 = arith.constant 0 : index
    %c0_0 = arith.constant 0 : index
    %0 = vector.load %arg2[%c0, %c0_0] : memref<128x128xbf16, #tpu.memory_space<vmem>>, vector<128x128xbf16>
    %c0_1 = arith.constant 0 : index
    %c0_2 = arith.constant 0 : index
    %1 = vector.load %arg3[%c0_1, %c0_2] : memref<128x128xbf16, #tpu.memory_space<vmem>>, vector<128x128xbf16>
    %cst = arith.constant dense<0.000000e+00> : vector<128x128xf32>
    %2 = tpu.matmul %0, %1, %cst {dimension_numbers = #tpu.dot_dimension_numbers<[1], [0], [0], [1], [0, 0, 1, 1], [], []>} : vector<128x128xbf16>, vector<128x128xbf16>, vector<128x128xf32> -> vector<128x128xf32>
    %c0_3 = arith.constant 0 : index
    %c0_4 = arith.constant 0 : index
    %3 = vector.load %arg4[%c0_3, %c0_4] : memref<1x128xf32, #tpu.memory_space<vmem>>, vector<1x128xf32>
    %4 = vector.broadcast %3 : vector<1x128xf32> to vector<128x128xf32>
    %5 = arith.addf %2, %4 : vector<128x128xf32>
    %6 = arith.mulf %5, %5 : vector<128x128xf32>
    %7 = arith.mulf %5, %6 : vector<128x128xf32>
    %cst_5 = arith.constant 4.471500e-02 : f32
    %8 = vector.broadcast %cst_5 : f32 to vector<128x128xf32>
    %9 = arith.mulf %8, %7 : vector<128x128xf32>
    %10 = arith.addf %5, %9 : vector<128x128xf32>
    %cst_6 = arith.constant 0.797884583 : f32
    %11 = vector.broadcast %cst_6 : f32 to vector<128x128xf32>
    %12 = arith.mulf %11, %10 : vector<128x128xf32>
    %13 = math.tanh %12 : vector<128x128xf32>
    %cst_7 = arith.constant 1.000000e+00 : f32
    %14 = vector.broadcast %cst_7 : f32 to vector<128x128xf32>
    %15 = arith.addf %14, %13 : vector<128x128xf32>
    %cst_8 = arith.constant 5.000000e-01 : f32
    %16 = vector.broadcast %cst_8 : f32 to vector<128x128xf32>
    %17 = arith.mulf %16, %15 : vector<128x128xf32>
    %18 = arith.mulf %5, %17 : vector<128x128xf32>
    %19 = arith.truncf %18 : vector<128x128xf32> to vector<128x128xbf16>
    %c0_9 = arith.constant 0 : index
    %c0_10 = arith.constant 0 : index
    %20 = vector.load %arg5[%c0_9, %c0_10] : memref<128x128xbf16, #tpu.memory_space<vmem>>, vector<128x128xbf16>
    %cst_11 = arith.constant dense<0.000000e+00> : vector<128x128xf32>
    %21 = tpu.matmul %19, %20, %cst_11 {dimension_numbers = #tpu.dot_dimension_numbers<[1], [0], [0], [1], [0, 0, 1, 1], [], []>} : vector<128x128xbf16>, vector<128x128xbf16>, vector<128x128xf32> -> vector<128x128xf32>
    %c0_12 = arith.constant 0 : index
    %c0_13 = arith.constant 0 : index
    %22 = vector.load %arg6[%c0_12, %c0_13] : memref<1x128xf32, #tpu.memory_space<vmem>>, vector<1x128xf32>
    %23 = vector.broadcast %22 : vector<1x128xf32> to vector<128x128xf32>
    %24 = arith.addf %21, %23 : vector<128x128xf32>
    %25 = arith.truncf %24 : vector<128x128xf32> to vector<128x128xbf16>
    %c0_14 = arith.constant 0 : index
    %c0_15 = arith.constant 0 : index
    %26 = vector.load %arg7[%c0_14, %c0_15] : memref<128x128xbf16, #tpu.memory_space<vmem>>, vector<128x128xbf16>
    tpu.vector_store %arg7[%c0_14, %c0_15], %25 {strides = array<i32>} : memref<128x128xbf16, #tpu.memory_space<vmem>>, vector<128x128xbf16>,
    %c0_16 = arith.constant 0 : index
    %c0_17 = arith.constant 0 : index
    %27 = vector.load %arg1[%c0_16, %c0_17] : memref<8x16xf32, #tpu.memory_space<vmem>>, vector<8x16xf32>
    %28 = vector.shape_cast %24 : vector<128x128xf32> to vector<8x16x128xf32>
    %29 = vector.shape_cast %27 : vector<8x16xf32> to vector<8x16x1xf32>
    %30 = vector.broadcast %29 : vector<8x16x1xf32> to vector<8x16x128xf32>
    %31 = arith.mulf %28, %30 : vector<8x16x128xf32>
    %cst_18 = arith.constant dense<0.000000e+00> : vector<8x128xf32>
    %32 = vector.multi_reduction <add>, %31, %cst_18 [1] : vector<8x16x128xf32> to vector<8x128xf32>
    %cst_19 = arith.constant dense<0.000000e+00> : vector<8xf32>
    %33 = vector.multi_reduction <add>, %27, %cst_19 [1] : vector<8x16xf32> to vector<8xf32>
    %34 = vector.shape_cast %33 : vector<8xf32> to vector<8x1xf32>
    %cst_20 = arith.constant 1.000000e+00 : f32
    %35 = vector.broadcast %cst_20 : f32 to vector<8x1xf32>
    %36 = arith.maximumf %34, %35 : vector<8x1xf32>
    %37 = tpu.reciprocal %36 {approx = true} : vector<8x1xf32> -> vector<8x1xf32>
    %38 = vector.broadcast %37 : vector<8x1xf32> to vector<8x128xf32>
    %39 = arith.mulf %32, %38 : vector<8x128xf32>
    %c0_21 = arith.constant 0 : index
    %c0_22 = arith.constant 0 : index
    %40 = vector.load %arg8[%c0_21, %c0_22] : memref<8x128xf32, #tpu.memory_space<vmem>>, vector<8x128xf32>
    tpu.vector_store %arg8[%c0_21, %c0_22], %39 {strides = array<i32>} : memref<8x128xf32, #tpu.memory_space<vmem>>, vector<8x128xf32>,
    return
  }
  func.func @transform_0(%arg0: i32) -> (i32, i32) {
    %c0_i32 = arith.constant 0 : i32
    %c0_i32_0 = arith.constant 0 : i32
    return %arg0, %c0_i32 : i32, i32
  }
  func.func @transform_1(%arg0: i32) -> (i32, i32) {
    %c0_i32 = arith.constant 0 : i32
    %c0_i32_0 = arith.constant 0 : i32
    return %arg0, %c0_i32 : i32, i32
  }
  func.func @transform_2(%arg0: i32) -> (i32, i32) {
    %c0_i32 = arith.constant 0 : i32
    %c0_i32_0 = arith.constant 0 : i32
    %c0_i32_1 = arith.constant 0 : i32
    return %c0_i32, %c0_i32_0 : i32, i32
  }
  func.func @transform_3(%arg0: i32) -> (i32, i32) {
    %c0_i32 = arith.constant 0 : i32
    %c0_i32_0 = arith.constant 0 : i32
    %c0_i32_1 = arith.constant 0 : i32
    return %c0_i32, %c0_i32_0 : i32, i32
  }
  func.func @transform_4(%arg0: i32) -> (i32, i32) {
    %c0_i32 = arith.constant 0 : i32
    %c0_i32_0 = arith.constant 0 : i32
    %c0_i32_1 = arith.constant 0 : i32
    return %c0_i32, %c0_i32_0 : i32, i32
  }
  func.func @transform_5(%arg0: i32) -> (i32, i32) {
    %c0_i32 = arith.constant 0 : i32
    %c0_i32_0 = arith.constant 0 : i32
    %c0_i32_1 = arith.constant 0 : i32
    return %c0_i32, %c0_i32_0 : i32, i32
  }
  func.func @transform_6(%arg0: i32) -> (i32, i32) {
    %c0_i32 = arith.constant 0 : i32
    %c0_i32_0 = arith.constant 0 : i32
    return %arg0, %c0_i32 : i32, i32
  }
  func.func @transform_7(%arg0: i32) -> (i32, i32) {
    %c0_i32 = arith.constant 0 : i32
    %c0_i32_0 = arith.constant 0 : i32
    return %arg0, %c0_i32 : i32, i32
  }
}

</mosaic_0001>

<bundles_post_ra>
// kernel: forward.1
= control target key start
LH: loop header
LB: loop body
LE: loop exit
PB: predicated region body
PF: predicated region fallthrough
CT: control target
= control target key end

     0   :  { %v509_v12 = vlaneseq  ;;  %vm684_vm0 = vcmask 130048   ;;  %vm723_vm1 = vcmask 1041409   ;;  %vm726_vm2 = vcmask 1042434   ;;  %s1311_s2 = inlined_call_operand.vmem [shape: bf16[128,128], index: 2, kind: input, shape index: {}]   ;;  %s1312_s3 = inlined_call_operand.vmem [shape: f32[1,128], index: 3, kind: input, shape index: {}, may-alias: {3,5}]   ;;  %s1313_s1 = inlined_call_operand.vmem [shape: bf16[128,128], index: 1, kind: input, shape index: {}]   ;;  %s1314_s0 = inlined_call_operand.vmem [shape: f32[8,16], index: 0, kind: input, shape index: {}]   ;;  %s1315_s4 = inlined_call_operand.vmem [shape: bf16[128,128], index: 4, kind: input, shape index: {}]   ;;  %s1316_s5 = inlined_call_operand.vmem [shape: f32[1,128], index: 5, kind: input, shape index: {}, may-alias: {3,5}]   ;;  %s1317_s6 = inlined_call_operand.vmem [shape: bf16[128,128], index: 6, kind: output, shape index: {0}]   ;;  %s1318_s7 = inlined_call_operand.vmem [shape: f32[8,128], index: 7, kind: output, shape index: {1}]  }
   0x1   :  { %v864_v0 = vld [vmem:[%s1311_s2 + $0x38] sm:$0xff]  ;;  %v863_v1 = vld [vmem:[%s1311_s2 + $0x30] sm:$0xff]  ;;  %v862_v2 = vld [vmem:[%s1311_s2 + $0x28] sm:$0xff]  ;;  %vm729_vm3 = vcmask 1043459   ;;  %vm732_vm4 = vcmask 1044484   ;;  %vm735_vm5 = vcmask 1045509  }
   0x2   :  { %157 = vmatpush.bf16.msra.mxu0 %v864_v0  ;;  %920 = vmatpush.bf16.msra.mxu2 %v864_v0  ;;  %v861_v3 = vld [vmem:[%s1311_s2 + $0x20] sm:$0xff]  ;;  %v860_v4 = vld [vmem:[%s1311_s2 + $0x18] sm:$0xff]  ;;  %v859_v5 = vld [vmem:[%s1311_s2 + $0x10] sm:$0xff]  ;;  %v1058_v13 = vshrl.u32 %v509_v12, 7  ;;  %vm738_vm6 = vcmask 1046534   ;;  %vm741_vm7 = vcmask 1047559  }
   0x3   :  { %v858_v6 = vld [vmem:[%s1311_s2 + $0x8] sm:$0xff]  ;;  %v857_v7 = vld [vmem:[%s1311_s2] sm:$0xff]  ;;  %v851_v17 = vld [vmem:[%s1313_s1 + $0x10] sm:$0xff] }
   0x4   :  { %v849_v8 = vld [vmem:[%s1313_s1] sm:$0xff]  ;;  %v850_v10 = vld [vmem:[%s1313_s1 + $0x8] sm:$0xff]  ;;  %939 = vset.pattern.permute.xlu2 %v1058_v13  ;;  %v1062_v14 = vadd.s32 8, %v1058_v13  ;;  %938 = vset.pattern.permute.xlu1 %v1058_v13  ;;  %v855_v18 = vld [vmem:[%s1313_s1 + $0x30] sm:$0xff] }
   0x5   :  { %v853_v9 = vld [vmem:[%s1313_s1 + $0x20] sm:$0xff]  ;;  %v854_v11 = vld [vmem:[%s1313_s1 + $0x28] sm:$0xff]  ;;  %v852_v19 = vld [vmem:[%s1313_s1 + $0x18] sm:$0xff] }
   0x6   :  { %158 = vmatpush.bf16.msra.mxu0 %v863_v1  ;;  %921 = vmatpush.bf16.msra.mxu2 %v863_v1  ;;  %v1068_v15 = vld [vmem:[%s1314_s0] sm:$0xff]  ;;  %v856_v20 = vld [vmem:[%s1313_s1 + $0x38] sm:$0xff]  ;;  %v871_v23 = vld [vmem:[%s1315_s4 + $0x30] sm:$0xff] }
   0x7   :  { %936 = vset.pattern.permute.xlu0 %v1062_v14  ;;  %v534_v16 = vperm.slane %v1068_v15, 2  ;;  %v872_v21 = vld [vmem:[%s1315_s4 + $0x38] sm:$0xff]  ;;  %v547_v22 = vperm.slane %v1068_v15, 3  ;;  %v870_v24 = vld [vmem:[%s1315_s4 + $0x28] sm:$0xff]  ;;  %v869_v25 = vld [vmem:[%s1315_s4 + $0x20] sm:$0xff]  ;;  %v521_v27 = vperm.slane %v1068_v15, 1 }
   0x8   :  { %426 = vmatpush.bf16.msra.mxu1 %v872_v21  ;;  %928 = vmatpush.bf16.msra.mxu3 %v872_v21  ;;  %v868_v26 = vld [vmem:[%s1315_s4 + $0x18] sm:$0xff]  ;;  %v573_v28 = vperm.slane %v1068_v15, 5  ;;  %v867_v29 = vld [vmem:[%s1315_s4 + $0x10] sm:$0xff]  ;;  %v866_v30 = vld [vmem:[%s1315_s4 + $0x8] sm:$0xff]  ;;  %v508_v33 = vperm.slane %v1068_v15, 0 }
   0x9   :  { %v1117_v31 = vld [vmem:[%s1312_s3] ss:$0 sm:$0xff] }
   0xa   :  { %159 = vmatpush.bf16.msra.mxu0 %v862_v2  ;;  %922 = vmatpush.bf16.msra.mxu2 %v862_v2  ;;  %v865_v32 = vld [vmem:[%s1315_s4] sm:$0xff] }
   0xc   :  { %539 = vperm.xlu2 %939, %v534_v16   ;;  %427 = vmatpush.bf16.msra.mxu1 %v871_v23 }
   0xd   :  { %929 = vmatpush.bf16.msra.mxu3 %v871_v23  ;;  %526 = vperm.xlu1 %938, %v521_v27  }
   0xe   :  { %160 = vmatpush.bf16.msra.mxu0 %v861_v3  ;;  %923 = vmatpush.bf16.msra.mxu2 %v861_v3 }
   0xf   :  { %519 = vperm.xlu0 %936, %v508_v33  }
  0x10   :  { %428 = vmatpush.bf16.msra.mxu1 %v870_v24 }
  0x11   :  { %930 = vmatpush.bf16.msra.mxu3 %v870_v24 }
  0x12   :  { %161 = vmatpush.bf16.msra.mxu0 %v860_v4  ;;  %924 = vmatpush.bf16.msra.mxu2 %v860_v4 }
  0x14   :  { %942 = vset.pattern.permute.xlu2 %v1062_v14  ;;  %429 = vmatpush.bf16.msra.mxu1 %v869_v25 }
  0x15   :  { %931 = vmatpush.bf16.msra.mxu3 %v869_v25  ;;  %940 = vset.pattern.permute.xlu1 %v1062_v14 }
  0x16   :  { %162 = vmatpush.bf16.msra.mxu0 %v859_v5  ;;  %925 = vmatpush.bf16.msra.mxu2 %v859_v5 }
  0x17   :  { %937 = vset.pattern.permute.xlu0 %v1058_v13 }
  0x18   :  { %430 = vmatpush.bf16.msra.mxu1 %v868_v26 }
  0x19   :  { %932 = vmatpush.bf16.msra.mxu3 %v868_v26  ;;  %v685_v26 = vsel %vm684_vm0, %v1068_v15, 0.0 }
  0x1a   :  { %163 = vmatpush.bf16.msra.mxu0 %v858_v6  ;;  %926 = vmatpush.bf16.msra.mxu2 %v858_v6 }
  0x1c   :  { %545 = vperm.xlu2 %942, %v534_v16   ;;  %431 = vmatpush.bf16.msra.mxu1 %v867_v29 }
  0x1d   :  { %933 = vmatpush.bf16.msra.mxu3 %v867_v29  ;;  %532 = vperm.xlu1 %940, %v521_v27  }
  0x1e   :  { %164 = vmatpush.bf16.msra.mxu0 %v857_v7  ;;  %927 = vmatpush.bf16.msra.mxu2 %v857_v7 }
  0x1f   :  { %513 = vperm.xlu0 %937, %v508_v33  }
  0x20   :  { %432 = vmatpush.bf16.msra.mxu1 %v866_v30 }
  0x21   :  { %165 = vmatmul.bf16.vlgmr.msra.gmra.mxu0 %v849_v8  ;;  %185 = vmatmul.bf16.vlgmr.msra.gmra.mxu2 %v853_v9 }
  0x22   :  { %934 = vmatpush.bf16.msra.mxu3 %v866_v30 }
  0x24   :  { %558 = vperm.xlu2 %942, %v547_v22   ;;  %433 = vmatpush.bf16.msra.mxu1 %v865_v32 }
  0x25   :  { %941 = vset.pattern.permute.xlu1 %v1058_v13 }
  0x26   :  { %935 = vmatpush.bf16.msra.mxu3 %v865_v32 }
  0x2c   :  { %944 = vset.pattern.permute.xlu2 %v1058_v13 }
  0x2d   :  { %552 = vperm.xlu1 %941, %v547_v22  }
  0x31   :  { %170 = vmatmul.bf16.gmra.mxu0 %v850_v10  ;;  %190 = vmatmul.bf16.gmra.mxu2 %v854_v11 }
  0x34   :  { %578 = vperm.xlu2 %944, %v573_v28  }
  0x35   :  { %943 = vset.pattern.permute.xlu1 %v1062_v14 }
  0x41   :  { %175 = vmatmul.bf16.gmra.mxu0 %v851_v17  ;;  %195 = vmatmul.bf16.gmra.mxu2 %v855_v18 }
  0x51   :  { %180 = vmatmul.bf16.gmra.mxu0 %v852_v19  ;;  %200 = vmatmul.bf16.gmra.mxu2 %v856_v20  ;;  %v560_v20 = vperm.slane %v1068_v15, 4 }
  0x53   :  { %565 = vperm.xlu0 %937, %v560_v20   ;;  %571 = vperm.xlu1 %943, %v560_v20  }
  0x5b   :  { %584 = vperm.xlu1 %943, %v573_v28  }
  0x5d   :  { %686 = vadd.xlane.f32.xlu2 %v685_v26 }
  0x9e   :  { %v166_v34 = vpop.f32.mrf.mxu0 }
  0x9f   :  { %v1125_v35 = vadd.f32 %v1117_v31, %v166_v34 }
  0xa1   :  { %v206_v36 = vmul.f32 %v1125_v35, %v1125_v35 }
  0xa3   :  { %v222_v37 = vmul.f32 %v206_v36, %v1125_v35 }
  0xa4   :  { %v186_v38 = vpop.f32.mrf.mxu2 }
  0xa5   :  { %v238_v39 = vmul.f32 0.044715, %v222_v37  ;;  %v1131_v40 = vadd.f32 %v1117_v31, %v186_v38 }
  0xa6   :  { %v168_v41 = vpop.f32.mrf.mxu0 }
  0xa7   :  { %v254_v42 = vadd.f32 %v238_v39, %v1125_v35  ;;  %v214_v43 = vmul.f32 %v1131_v40, %v1131_v40  ;;  %v1137_v44 = vadd.f32 %v1117_v31, %v168_v41 }
  0xa9   :  { %v230_v45 = vmul.f32 %v214_v43, %v1131_v40  ;;  %v207_v46 = vmul.f32 %v1137_v44, %v1137_v44  ;;  %v270_v47 = vmul.f32 0.7978846, %v254_v42 }
  0xab   :  { %v246_v48 = vmul.f32 0.044715, %v230_v45  ;;  %v223_v49 = vmul.f32 %v207_v46, %v1137_v44  ;;  %948 = vtanh.f32 %v270_v47 }
  0xac   :  { %v188_v50 = vpop.f32.mrf.mxu2 }
  0xad   :  { %v262_v51 = vadd.f32 %v246_v48, %v1131_v40  ;;  %v239_v52 = vmul.f32 0.044715, %v223_v49  ;;  %v1147_v53 = vadd.f32 %v1117_v31, %v188_v50 }
  0xae   :  { %v171_v54 = vpop.f32.mrf.mxu0 }
  0xaf   :  { %v255_v55 = vadd.f32 %v239_v52, %v1137_v44  ;;  %v215_v56 = vmul.f32 %v1147_v53, %v1147_v53  ;;  %v1153_v57 = vadd.f32 %v1117_v31, %v171_v54  ;;  %v278_v58 = vmul.f32 0.7978846, %v262_v51 }
  0xb1   :  { %v231_v59 = vmul.f32 %v215_v56, %v1147_v53  ;;  %v208_v60 = vmul.f32 %v1153_v57, %v1153_v57  ;;  %v271_v61 = vmul.f32 0.7978846, %v255_v55  ;;  %950 = vtanh.f32 %v278_v58  ;;  %v949_v62 = vpop.eup %948 }
  0xb2   :  { %v302_v6 = vadd.f32 1.0, %v949_v62 }
  0xb3   :  { %v247_v63 = vmul.f32 0.044715, %v231_v59  ;;  %v224_v0 = vmul.f32 %v208_v60, %v1153_v57  ;;  %952 = vtanh.f32 %v271_v61 }
  0xb4   :  { %v191_v1 = vpop.f32.mrf.mxu2  ;;  %v318_v19 = vmul.f32 0.5, %v302_v6 }
  0xb5   :  { %v263_v2 = vadd.f32 %v247_v63, %v1147_v53  ;;  %v240_v3 = vmul.f32 0.044715, %v224_v0  ;;  %v1163_v4 = vadd.f32 %v1117_v31, %v191_v1 }
  0xb6   :  { %v173_v5 = vpop.f32.mrf.mxu0  ;;  %v334_v33 = vmul.f32 %v318_v19, %v1125_v35 }
  0xb7   :  { %v256_v7 = vadd.f32 %v240_v3, %v1153_v57  ;;  %v216_v8 = vmul.f32 %v1163_v4, %v1163_v4  ;;  %v1169_v9 = vadd.f32 %v1117_v31, %v173_v5  ;;  %v279_v10 = vmul.f32 0.7978846, %v263_v2  ;;  %v951_v11 = vpop.eup %950 }
  0xb8   :  { %v310_v25 = vadd.f32 1.0, %v951_v11 }
  0xb9   :  { %v953_v12 = vpop.eup %952  ;;  %v232_v13 = vmul.f32 %v216_v8, %v1163_v4  ;;  %v209_v16 = vmul.f32 %v1169_v9, %v1169_v9  ;;  %954 = vtanh.f32 %v279_v10  ;;  %v272_v17 = vmul.f32 0.7978846, %v256_v7 }
  0xba   :  { %v303_v18 = vadd.f32 1.0, %v953_v12  ;;  %v326_v45 = vmul.f32 0.5, %v310_v25 }
  0xbb   :  { %v248_v21 = vmul.f32 0.044715, %v232_v13  ;;  %v225_v22 = vmul.f32 %v209_v16, %v1169_v9  ;;  %956 = vtanh.f32 %v272_v17 }
  0xbc   :  { %v193_v23 = vpop.f32.mrf.mxu2  ;;  %v319_v24 = vmul.f32 0.5, %v303_v18  ;;  %v342_v52 = vmul.f32 %v326_v45, %v1131_v40 }
  0xbd   :  { %v264_v27 = vadd.f32 %v248_v21, %v1163_v4  ;;  %v241_v29 = vmul.f32 0.044715, %v225_v22  ;;  %v1180_v30 = vadd.f32 %v1117_v31, %v193_v23 }
  0xbe   :  { %v176_v32 = vpop.f32.mrf.mxu0  ;;  %v335_v34 = vmul.f32 %v319_v24, %v1137_v44 }
  0xbf   :  { %v955_v36 = vpop.eup %954  ;;  %v257_v37 = vadd.f32 %v241_v29, %v1169_v9  ;;  %v217_v38 = vmul.f32 %v1180_v30, %v1180_v30  ;;  %v1188_v39 = vadd.f32 %v1117_v31, %v176_v32  ;;  %v280_v41 = vmul.f32 0.7978846, %v264_v27 }
  0xc0   :  { %v350_v42 = vpack.c.bf16 %v335_v34, %v334_v33  ;;  %v311_v43 = vadd.f32 1.0, %v955_v36  ;;  %v586_v34 = vperm.slane %v1068_v15, 6 }
  0xc1   :  { %v233_v46 = vmul.f32 %v217_v38, %v1180_v30  ;;  %v210_v35 = vmul.f32 %v1188_v39, %v1188_v39  ;;  %v273_v47 = vmul.f32 0.7978846, %v257_v37  ;;  %958 = vtanh.f32 %v280_v41  ;;  %v957_v48 = vpop.eup %956 }
  0xc2   :  { %434 = vmatmul.bf16.vlgmr.msra.gmra.mxu1 %v350_v42  ;;  %v327_v44 = vmul.f32 0.5, %v311_v43  ;;  %v304_v61 = vadd.f32 1.0, %v957_v48  ;;  %597 = vperm.xlu1 %943, %v586_v34  }
  0xc3   :  { %v249_v49 = vmul.f32 0.044715, %v233_v46  ;;  %v226_v50 = vmul.f32 %v210_v35, %v1188_v39  ;;  %960 = vtanh.f32 %v273_v47  ;;  %591 = vperm.xlu0 %937, %v586_v34  }
  0xc4   :  { %v196_v51 = vpop.f32.mrf.mxu2  ;;  %v343_v54 = vmul.f32 %v327_v44, %v1147_v53  ;;  %v320_v7 = vmul.f32 0.5, %v304_v61 }
  0xc5   :  { %v265_v55 = vadd.f32 %v249_v49, %v1180_v30  ;;  %v242_v56 = vmul.f32 0.044715, %v226_v50  ;;  %v1198_v58 = vadd.f32 %v1117_v31, %v196_v51 }
  0xc6   :  { %v178_v59 = vpop.f32.mrf.mxu0  ;;  %v354_v60 = vpack.c.bf16 %v343_v54, %v342_v52  ;;  %v336_v20 = vmul.f32 %v320_v7, %v1153_v57  ;;  %v599_v52 = vperm.slane %v1068_v15, 7 }
  0xc7   :  { %v258_v62 = vadd.f32 %v242_v56, %v1188_v39  ;;  %v218_v63 = vmul.f32 %v1198_v58, %v1198_v58  ;;  %v1204_v0 = vadd.f32 %v1117_v31, %v178_v59  ;;  %v281_v40 = vmul.f32 0.7978846, %v265_v55  ;;  %v959_v1 = vpop.eup %958 }
  0xc8   :  { %454 = vmatmul.bf16.vlgmr.msra.gmra.mxu3 %v354_v60  ;;  %v312_v13 = vadd.f32 1.0, %v959_v1 }
  0xc9   :  { %v961_v53 = vpop.eup %960  ;;  %v234_v2 = vmul.f32 %v218_v63, %v1198_v58  ;;  %v211_v3 = vmul.f32 %v1204_v0, %v1204_v0  ;;  %962 = vtanh.f32 %v281_v40  ;;  %v274_v5 = vmul.f32 0.7978846, %v258_v62 }
  0xca   :  { %v305_v6 = vadd.f32 1.0, %v961_v53  ;;  %v328_v29 = vmul.f32 0.5, %v312_v13  ;;  %610 = vperm.xlu1 %943, %v599_v52  }
  0xcb   :  { %v250_v8 = vmul.f32 0.044715, %v234_v2  ;;  %v227_v10 = vmul.f32 %v211_v3, %v1204_v0  ;;  %964 = vtanh.f32 %v274_v5  ;;  %604 = vperm.xlu0 %937, %v599_v52  }
  0xcc   :  { %v198_v11 = vpop.f32.mrf.mxu2  ;;  %v321_v12 = vmul.f32 0.5, %v305_v6  ;;  %v344_v42 = vmul.f32 %v328_v29, %v1163_v4 }
  0xcd   :  { %v266_v16 = vadd.f32 %v250_v8, %v1198_v58  ;;  %v243_v17 = vmul.f32 0.044715, %v227_v10  ;;  %v1214_v18 = vadd.f32 %v1117_v31, %v198_v11 }
  0xce   :  { %v181_v19 = vpop.f32.mrf.mxu0  ;;  %v337_v21 = vmul.f32 %v321_v12, %v1169_v9 }
  0xcf   :  { %v963_v22 = vpop.eup %962  ;;  %v259_v23 = vadd.f32 %v243_v17, %v1204_v0  ;;  %v219_v28 = vmul.f32 %v1214_v18, %v1214_v18  ;;  %v1222_v24 = vadd.f32 %v1117_v31, %v181_v19  ;;  %v282_v25 = vmul.f32 0.7978846, %v266_v16 }
  0xd0   :  { %v351_v26 = vpack.c.bf16 %v337_v21, %v336_v20  ;;  %v313_v27 = vadd.f32 1.0, %v963_v22 }
  0xd1   :  { %v235_v32 = vmul.f32 %v219_v28, %v1214_v18  ;;  %v212_v57 = vmul.f32 %v1222_v24, %v1222_v24  ;;  %v275_v33 = vmul.f32 0.7978846, %v259_v23  ;;  %966 = vtanh.f32 %v282_v25  ;;  %v965_v36 = vpop.eup %964 }
  0xd2   :  { %439 = vmatmul.bf16.gmra.mxu1 %v351_v26  ;;  %v329_v9 = vmul.f32 0.5, %v313_v27  ;;  %v306_v48 = vadd.f32 1.0, %v965_v36 }
  0xd3   :  { %v251_v37 = vmul.f32 0.044715, %v235_v32  ;;  %v228_v38 = vmul.f32 %v212_v57, %v1222_v24  ;;  %968 = vtanh.f32 %v275_v33  ;;  %945 = vset.pattern.permute.xlu0 %v1062_v14 }
  0xd4   :  { %v201_v41 = vpop.f32.mrf.mxu2  ;;  %v345_v43 = vmul.f32 %v329_v9, %v1180_v30  ;;  %v322_v61 = vmul.f32 0.5, %v306_v48 }
  0xd5   :  { %v267_v45 = vadd.f32 %v251_v37, %v1214_v18  ;;  %v244_v46 = vmul.f32 0.044715, %v228_v38  ;;  %v1233_v35 = vadd.f32 %v1117_v31, %v201_v41 }
  0xd6   :  { %v183_v47 = vpop.f32.mrf.mxu0  ;;  %v355_v44 = vpack.c.bf16 %v345_v43, %v344_v42  ;;  %v338_v5 = vmul.f32 %v322_v61, %v1188_v39 }
  0xd7   :  { %v260_v49 = vadd.f32 %v244_v46, %v1222_v24  ;;  %v220_v50 = vmul.f32 %v1233_v35, %v1233_v35  ;;  %v184_v4 = vadd.f32 %v1117_v31, %v183_v47  ;;  %v283_v51 = vmul.f32 0.7978846, %v267_v45  ;;  %v967_v30 = vpop.eup %966  ;;  %v527_v45 = vpop.permute.xlu1 %526  ;;  %v1253_v46 = vld [vmem:[%s1316_s5] ss:$0 sm:$0xff] }
  0xd8   :  { %459 = vmatmul.bf16.gmra.mxu3 %v355_v44  ;;  %v314_v53 = vadd.f32 1.0, %v967_v30 }
  0xd9   :  { %v969_v54 = vpop.eup %968  ;;  %v236_v55 = vmul.f32 %v220_v50, %v1233_v35  ;;  %v213_v56 = vmul.f32 %v184_v4, %v184_v4  ;;  %970 = vtanh.f32 %v283_v51  ;;  %v276_v59 = vmul.f32 0.7978846, %v260_v49  ;;  %v540_v50 = vpop.permute.xlu2 %539 }
  0xda   :  { %v307_v60 = vadd.f32 1.0, %v969_v54  ;;  %v330_v16 = vmul.f32 0.5, %v314_v53 }
  0xdb   :  { %v252_v62 = vmul.f32 0.044715, %v236_v55  ;;  %v229_v63 = vmul.f32 %v213_v56, %v184_v4  ;;  %972 = vtanh.f32 %v276_v59 }
  0xdc   :  { %v203_v40 = vpop.f32.mrf.mxu2  ;;  %v323_v1 = vmul.f32 0.5, %v307_v60 }
  0xdd   :  { %v268_v2 = vadd.f32 %v252_v62, %v1233_v35  ;;  %v245_v3 = vmul.f32 0.044715, %v229_v63  ;;  %v204_v15 = vadd.f32 %v1117_v31, %v203_v40  ;;  %v346_v31 = vmul.f32 %v330_v16, %v1198_v58  ;;  %v520_v62 = vpop.permute.xlu0 %519 }
  0xde   :  { %v339_v6 = vmul.f32 %v323_v1, %v1204_v0 }
  0xdf   :  { %v971_v7 = vpop.eup %970  ;;  %v261_v8 = vadd.f32 %v245_v3, %v184_v4  ;;  %v221_v10 = vmul.f32 %v204_v15, %v204_v15  ;;  %v284_v11 = vmul.f32 0.7978846, %v268_v2 }
  0xe0   :  { %v352_v12 = vpack.c.bf16 %v339_v6, %v338_v5  ;;  %v315_v13 = vadd.f32 1.0, %v971_v7 }
  0xe1   :  { %v237_v17 = vmul.f32 %v221_v10, %v204_v15  ;;  %v277_v19 = vmul.f32 0.7978846, %v261_v8  ;;  %974 = vtanh.f32 %v284_v11  ;;  %v973_v21 = vpop.eup %972  ;;  %v546_v59 = vpop.permute.xlu2 %545 }
  0xe2   :  { %444 = vmatmul.bf16.gmra.mxu1 %v352_v12  ;;  %v331_v20 = vmul.f32 0.5, %v315_v13  ;;  %v308_v28 = vadd.f32 1.0, %v973_v21 }
  0xe3   :  { %v253_v22 = vmul.f32 0.044715, %v237_v17  ;;  %976 = vtanh.f32 %v277_v19 }
  0xe4   :  { %v347_v39 = vmul.f32 %v331_v20, %v1214_v18  ;;  %v324_v32 = vmul.f32 0.5, %v308_v28 }
  0xe5   :  { %v269_v0 = vadd.f32 %v253_v22, %v204_v15 }
  0xe6   :  { %v356_v23 = vpack.c.bf16 %v347_v39, %v346_v31  ;;  %v340_v9 = vmul.f32 %v324_v32, %v1222_v24 }
  0xe7   :  { %v285_v25 = vmul.f32 0.7978846, %v269_v0  ;;  %v975_v26 = vpop.eup %974 }
  0xe8   :  { %464 = vmatmul.bf16.gmra.mxu3 %v356_v23  ;;  %v316_v33 = vadd.f32 1.0, %v975_v26 }
  0xe9   :  { %v977_v27 = vpop.eup %976  ;;  %978 = vtanh.f32 %v285_v25  ;;  %v559_v2 = vpop.permute.xlu2 %558 }
  0xea   :  { %v309_v29 = vadd.f32 1.0, %v977_v27  ;;  %v332_v37 = vmul.f32 0.5, %v316_v33 }
  0xec   :  { %v325_v57 = vmul.f32 0.5, %v309_v29  ;;  %v348_v38 = vmul.f32 %v332_v37, %v1233_v35  ;;  %v533_v35 = vpop.permute.xlu1 %532 }
  0xee   :  { %v341_v34 = vmul.f32 %v325_v57, %v184_v4 }
  0xef   :  { %v979_v58 = vpop.eup %978 }
  0xf0   :  { %v353_v36 = vpack.c.bf16 %v341_v34, %v340_v9  ;;  %v317_v18 = vadd.f32 1.0, %v979_v58 }
  0xf1   :  { %v579_v17 = vpop.permute.xlu2 %578 }
  0xf2   :  { %449 = vmatmul.bf16.gmra.mxu1 %v353_v36  ;;  %v333_v14 = vmul.f32 0.5, %v317_v18 }
  0xf4   :  { %v349_v41 = vmul.f32 %v333_v14, %v204_v15  ;;  %v1262_v55 = vpop.permute.xlu1 %552  ;;  %v514_v15 = vpop.permute.xlu0 %513 }
  0xf6   :  { %v357_v42 = vpack.c.bf16 %v349_v41, %v348_v38 }
  0xf8   :  { %469 = vmatmul.bf16.gmra.mxu3 %v357_v42 }
  0xf9   :  { %v687_v58 = vpop.xlane.xlu2 %686 }
  0xfc   :  { %v572_v53 = vpop.permute.xlu1 %571  ;;  %v566_v0 = vpop.permute.xlu0 %565 }
 0x104   :  { %v585_v31 = vpop.permute.xlu1 %584 }
 0x13f   :  { %v435_v43 = vpop.f32.mrf.mxu1 }
 0x140   :  { %v436_v47 = vadd.f32 %v1253_v46, %v435_v43  ;;  %v688_v43 = vmax.f32 %v687_v58, 1.0 }
 0x142   :  { %v612_v28 = vmul.f32 %v514_v15, %v436_v47  ;;  %980 = vrcp.f32 %v688_v43 }
 0x147   :  { %v437_v24 = vpop.f32.mrf.mxu1 }
 0x148   :  { %v438_v44 = vadd.f32 %v1253_v46, %v437_v24 }
 0x14a   :  { %v876_v48 = vpack.c.bf16 %v438_v44, %v436_v47  ;;  %v613_v22 = vmul.f32 %v520_v62, %v438_v44  ;;  %v598_v47 = vpop.permute.xlu1 %597  ;;  %v592_v44 = vpop.permute.xlu0 %591 }
 0x14b   :  { %v455_v49 = vpop.f32.mrf.mxu3 }
 0x14c   :  { %877 = vst [vmem:[%s1317_s6] sm:$0xff] %v876_v48   ;;  %v456_v30 = vadd.f32 %v1253_v46, %v455_v49  ;;  %v628_v27 = vadd.f32 %v613_v22, %v612_v28 }
 0x14e   :  { %v620_v29 = vmul.f32 %v566_v0, %v456_v30  ;;  %v629_v37 = vrot.slane %v628_v27, 4 }
 0x14f   :  { %v440_v4 = vpop.f32.mrf.mxu1 }
 0x150   :  { %v441_v60 = vadd.f32 %v1253_v46, %v440_v4  ;;  %v630_v4 = vadd.f32 %v629_v37, %v628_v27 }
 0x152   :  { %v614_v11 = vmul.f32 %v527_v45, %v441_v60 }
 0x153   :  { %v457_v51 = vpop.f32.mrf.mxu3 }
 0x154   :  { %v458_v52 = vadd.f32 %v1253_v46, %v457_v51 }
 0x156   :  { %v896_v54 = vpack.c.bf16 %v458_v52, %v456_v30  ;;  %v621_v25 = vmul.f32 %v572_v53, %v458_v52 }
 0x157   :  { %v442_v56 = vpop.f32.mrf.mxu1 }
 0x158   :  { %916 = vst [vmem:[%s1317_s6 + $0x20] sm:$0xff] %v896_v54   ;;  %v443_v61 = vadd.f32 %v1253_v46, %v442_v56  ;;  %v656_v9 = vadd.f32 %v621_v25, %v620_v29 }
 0x15a   :  { %v881_v63 = vpack.c.bf16 %v443_v61, %v441_v60  ;;  %v615_v7 = vmul.f32 %v533_v35, %v443_v61  ;;  %v657_v45 = vrot.slane %v656_v9, 4 }
 0x15b   :  { %v460_v40 = vpop.f32.mrf.mxu3 }
 0x15c   :  { %913 = vst [vmem:[%s1317_s6 + $0x8] sm:$0xff] %v881_v63   ;;  %v461_v5 = vadd.f32 %v1253_v46, %v460_v40  ;;  %v635_v16 = vadd.f32 %v615_v7, %v614_v11  ;;  %v631_v40 = vrot.slane %v630_v4, 2 }
 0x15e   :  { %v636_v26 = vrot.slane %v635_v16, 4  ;;  %v622_v36 = vmul.f32 %v579_v17, %v461_v5 }
 0x15f   :  { %v445_v1 = vpop.f32.mrf.mxu1 }
 0x160   :  { %v446_v8 = vadd.f32 %v1253_v46, %v445_v1  ;;  %v637_v34 = vadd.f32 %v636_v26, %v635_v16 }
 0x162   :  { %v616_v19 = vmul.f32 %v540_v50, %v446_v8  ;;  %v638_v24 = vrot.slane %v637_v34, 2 }
 0x163   :  { %v462_v3 = vpop.f32.mrf.mxu3 }
 0x164   :  { %v463_v6 = vadd.f32 %v1253_v46, %v462_v3  ;;  %v639_v60 = vadd.f32 %v638_v24, %v637_v34 }
 0x166   :  { %v901_v10 = vpack.c.bf16 %v463_v6, %v461_v5  ;;  %v623_v33 = vmul.f32 %v585_v31, %v463_v6  ;;  %v640_v7 = vrot.slane %v639_v60, 1 }
 0x167   :  { %v447_v12 = vpop.f32.mrf.mxu1 }
 0x168   :  { %917 = vst [vmem:[%s1317_s6 + $0x28] sm:$0xff] %v901_v10   ;;  %v448_v13 = vadd.f32 %v1253_v46, %v447_v12  ;;  %v663_v41 = vadd.f32 %v623_v33, %v622_v36  ;;  %v632_v10 = vadd.f32 %v631_v40, %v630_v4  ;;  %v641_v17 = vadd.f32 %v640_v7, %v639_v60 }
 0x16a   :  { %v886_v20 = vpack.c.bf16 %v448_v13, %v446_v8  ;;  %v617_v21 = vmul.f32 %v546_v59, %v448_v13  ;;  %v664_v52 = vrot.slane %v663_v41, 4  ;;  %v658_v59 = vadd.f32 %v657_v45, %v656_v9  ;;  %v1293_v13 = vpop.eup %980 }
 0x16b   :  { %v465_v39 = vpop.f32.mrf.mxu3  ;;  %v633_v22 = vrot.slane %v632_v10, 1  ;;  %v693_v33 = vrot.slane %v1293_v13, 3  ;;  %v696_v60 = vrot.slane %v1293_v13, 6 }
 0x16c   :  { %914 = vst [vmem:[%s1317_s6 + $0x10] sm:$0xff] %v886_v20   ;;  %v642_v23 = vadd.f32 %v617_v21, %v616_v19  ;;  %v466_v18 = vadd.f32 %v1253_v46, %v465_v39  ;;  %v665_v15 = vadd.f32 %v664_v52, %v663_v41  ;;  %v659_v6 = vrot.slane %v658_v59, 2 }
 0x16d   :  { %v691_v19 = vrot.slane %v1293_v13, 1  ;;  %v692_v39 = vrot.slane %v1293_v13, 2 }
 0x16e   :  { %v643_v32 = vrot.slane %v642_v23, 4  ;;  %v624_v48 = vmul.f32 %v592_v44, %v466_v18  ;;  %v660_v16 = vadd.f32 %v659_v6, %v658_v59  ;;  %v697_v6 = vrot.slane %v1293_v13, 7 }
 0x16f   :  { %v450_v57 = vpop.f32.mrf.mxu1  ;;  %v707_v29 = vmul.f32 %v691_v19, %v641_v17 }
 0x170   :  { %v644_v14 = vadd.f32 %v643_v32, %v642_v23  ;;  %v451_v49 = vadd.f32 %v1253_v46, %v450_v57  ;;  %v661_v27 = vrot.slane %v660_v16, 1  ;;  %v611_v32 = vpop.permute.xlu1 %610  ;;  %v605_v57 = vpop.permute.xlu0 %604 }
 0x171   :  { %v722_v45 = vrot.slane %v707_v29, 7 }
 0x172   :  { %v645_v51 = vrot.slane %v644_v14, 2  ;;  %v618_v61 = vmul.f32 %v1262_v55, %v451_v49  ;;  %v666_v55 = vrot.slane %v665_v15, 2  ;;  %v662_v43 = vadd.f32 %v661_v27, %v660_v16 }
 0x173   :  { %v467_v38 = vpop.f32.mrf.mxu3 }
 0x174   :  { %v468_v42 = vadd.f32 %v1253_v46, %v467_v38  ;;  %v646_v1 = vadd.f32 %v645_v51, %v644_v14  ;;  %v667_v28 = vadd.f32 %v666_v55, %v665_v15 }
 0x176   :  { %v906_v35 = vpack.c.bf16 %v468_v42, %v466_v18  ;;  %v625_v50 = vmul.f32 %v598_v47, %v468_v42  ;;  %v647_v11 = vrot.slane %v646_v1, 1  ;;  %v634_v18 = vadd.f32 %v633_v22, %v632_v10 }
 0x177   :  { %v452_v30 = vpop.f32.mrf.mxu1  ;;  %v668_v38 = vrot.slane %v667_v28, 1  ;;  %v694_v42 = vrot.slane %v1293_v13, 4 }
 0x178   :  { %918 = vst [vmem:[%s1317_s6 + $0x30] sm:$0xff] %v906_v35   ;;  %v670_v54 = vadd.f32 %v625_v50, %v624_v48  ;;  %v453_v56 = vadd.f32 %v1253_v46, %v452_v30  ;;  %v648_v31 = vadd.f32 %v647_v11, %v646_v1  ;;  %v706_v44 = vmul.f32 %v1293_v13, %v634_v18 }
 0x179   :  { %v695_v48 = vrot.slane %v1293_v13, 5  ;;  %v669_v50 = vadd.f32 %v668_v38, %v667_v28  ;;  %v710_v30 = vmul.f32 %v694_v42, %v662_v43 }
 0x17a   :  { %v891_v62 = vpack.c.bf16 %v453_v56, %v451_v49  ;;  %v619_v63 = vmul.f32 %v559_v2, %v453_v56  ;;  %v671_v53 = vrot.slane %v670_v54, 4  ;;  %v708_v37 = vmul.f32 %v692_v39, %v648_v31 }
 0x17b   :  { %v470_v3 = vpop.f32.mrf.mxu3  ;;  %v724_v52 = vsel %vm723_vm1, %v722_v45, %v706_v44  ;;  %v731_v40 = vrot.slane %v710_v30, 4 }
 0x17c   :  { %915 = vst [vmem:[%s1317_s6 + $0x18] sm:$0xff] %v891_v62   ;;  %v649_v5 = vadd.f32 %v619_v63, %v618_v61  ;;  %v672_v12 = vadd.f32 %v671_v53, %v670_v54  ;;  %v471_v21 = vadd.f32 %v1253_v46, %v470_v3  ;;  %v725_v49 = vrot.slane %v708_v37, 6 }
 0x17d   :  { %v711_v61 = vmul.f32 %v695_v48, %v669_v50 }
 0x17e   :  { %v650_v8 = vrot.slane %v649_v5, 4  ;;  %v673_v0 = vrot.slane %v672_v12, 2  ;;  %v626_v34 = vmul.f32 %v605_v57, %v471_v21  ;;  %v727_v56 = vsel %vm726_vm2, %v725_v49, %v724_v52 }
 0x17f   :  { %v734_v15 = vrot.slane %v711_v61, 3 }
 0x180   :  { %v651_v2 = vadd.f32 %v650_v8, %v649_v5  ;;  %v674_v14 = vadd.f32 %v673_v0, %v672_v12 }
 0x182   :  { %v652_v20 = vrot.slane %v651_v2, 2  ;;  %v675_v35 = vrot.slane %v674_v14, 1 }
 0x183   :  { %v472_v23 = vpop.f32.mrf.mxu3 }
 0x184   :  { %v653_v25 = vadd.f32 %v652_v20, %v651_v2  ;;  %v473_v26 = vadd.f32 %v1253_v46, %v472_v23  ;;  %v676_v59 = vadd.f32 %v675_v35, %v674_v14 }
 0x186   :  { %v654_v9 = vrot.slane %v653_v25, 1  ;;  %v911_v58 = vpack.c.bf16 %v473_v26, %v471_v21  ;;  %v627_v36 = vmul.f32 %v611_v32, %v473_v26  ;;  %v712_v53 = vmul.f32 %v696_v60, %v676_v59 }
 0x188   :  { %v655_v41 = vadd.f32 %v654_v9, %v653_v25  ;;  %919 = vst [vmem:[%s1317_s6 + $0x38] sm:$0xff] %v911_v58   ;;  %v677_v46 = vadd.f32 %v627_v36, %v626_v34  ;;  %v737_v10 = vrot.slane %v712_v53, 2 }
 0x18a   :  { %v709_v24 = vmul.f32 %v693_v33, %v655_v41  ;;  %v678_v47 = vrot.slane %v677_v46, 4 }
 0x18c   :  { %v728_v4 = vrot.slane %v709_v24, 5  ;;  %v679_v51 = vadd.f32 %v678_v47, %v677_v46 }
 0x18e   :  { %v680_v54 = vrot.slane %v679_v51, 2  ;;  %v730_v62 = vsel %vm729_vm3, %v728_v4, %v727_v56 }
 0x18f   :  { %v733_v3 = vsel %vm732_vm4, %v731_v40, %v730_v62 }
 0x190   :  { %v681_v63 = vadd.f32 %v680_v54, %v679_v51  ;;  %v736_v8 = vsel %vm735_vm5, %v734_v15, %v733_v3 }
 0x191   :  { %v739_v12 = vsel %vm738_vm6, %v737_v10, %v736_v8 }
 0x192   :  { %v682_v1 = vrot.slane %v681_v63, 1 }
 0x194   :  { %v683_v5 = vadd.f32 %v682_v1, %v681_v63 }
 0x196   :  { %v713_v7 = vmul.f32 %v697_v6, %v683_v5 }
 0x198   :  { %v740_v11 = vrot.slane %v713_v7, 1 }
 0x19a   :  { %v742_v55 = vsel %vm741_vm7, %v740_v11, %v739_v12 }
 0x19b   :  { %744 = vst [vmem:[%s1318_s7] sm:$0xff] %v742_v55 }

</bundles_post_ra>
